<compile_context>
chip_gen: v7x
topology: tpu7x:2x2x1
jax: 0.10.0
libtpu: 0.0.40
codegen_flags: <defaults>
</compile_context>

<pallas_src>
import functools
import math

import jax
import jax.numpy as jnp
from jax import lax
from jax.experimental import pallas as pl
from jax.experimental.pallas import tpu as pltpu


def _pe_dropout_kernel(seed_ref, x_ref, pe_ref, o_ref, *, p, training):
    # x_ref: (tile_S, B, D), pe_ref: (tile_S, 1, D), o_ref: (tile_S, B, D)
    x = x_ref[...]
    pe = pe_ref[...]
    y = x + pe  # broadcast over the batch (sublane) axis

    if training and p > 0.0:
        if p >= 1.0:
            y = jnp.zeros_like(y)
        else:
            tile_s, b, d = x_ref.shape
            # Counter-based PRNG: hash(global element index, seed).
            # Identical mask for any tiling; different bits per tile.
            s_iota = lax.broadcasted_iota(jnp.int32, y.shape, 0)
            b_iota = lax.broadcasted_iota(jnp.int32, y.shape, 1)
            d_iota = lax.broadcasted_iota(jnp.int32, y.shape, 2)
            row = pl.program_id(0) * tile_s + s_iota
            flat = (row * b + b_iota) * d + d_iota

            h = flat.astype(jnp.uint32)
            h = h + seed_ref[0].astype(jnp.uint32) * jnp.uint32(0x9E3779B1)
            h = h ^ (h >> jnp.uint32(16))
            h = h * jnp.uint32(0x7FEB352D)
            h = h ^ (h >> jnp.uint32(15))
            h = h * jnp.uint32(0x846CA68B)
            h = h ^ (h >> jnp.uint32(16))

            u31 = (h >> jnp.uint32(1)).astype(jnp.int32)     # uniform in [0, 2^31)
            thresh = jnp.int32(int(p * (1 << 31)))
            keep = u31 >= thresh                              # P(keep) = 1 - p
            scale = jnp.asarray(1.0 / (1.0 - p), dtype=y.dtype)
            y = jnp.where(keep, y * scale, jnp.zeros_like(y))

    o_ref[...] = y.astype(o_ref.dtype)


def make_positional_encoding(d_model, max_len):
    """Deterministically build the 'pe' buffer exactly like the torch module."""
    position = jnp.arange(max_len, dtype=jnp.float32)[:, None]            # (max_len, 1)
    div_term = jnp.exp(
        jnp.arange(0, d_model, 2, dtype=jnp.float32)
        * (-math.log(10000.0) / d_model)
    )                                                                      # (d_model//2,)
    pe = jnp.zeros((max_len, 1, d_model), dtype=jnp.float32)
    pe = pe.at[:, 0, 0::2].set(jnp.sin(position * div_term))
    pe = pe.at[:, 0, 1::2].set(jnp.cos(position * div_term))
    return pe


def positional_encoding_forward(x, pe, *, p=0.1, training=True, seed=0, tile_s=None):
    """x: (S, B, D); pe: (max_len, 1, D). Returns dropout(x + pe[:S])."""
    S, B, D = x.shape
    max_len = pe.shape[0]
    assert S <= max_len, "seq_len must not exceed max_len"

    if tile_s is None:
        # Aim for ~2 MiB per x tile (mem-bound sweet spot), multiple of 8 rows.
        bytes_per_row = B * D * x.dtype.itemsize
        tile_s = max(1, min(S, (2 * 1024 * 1024) // max(1, bytes_per_row)))
        if tile_s >= 8:
            tile_s = (tile_s // 8) * 8
    tile_s = int(min(tile_s, S))
    grid = (pl.cdiv(S, tile_s),)

    kernel = functools.partial(
        _pe_dropout_kernel, p=float(p), training=bool(training)
    )

    grid_spec = pltpu.PrefetchScalarGridSpec(
        num_scalar_prefetch=1,  # dropout seed lands in SMEM
        grid=grid,
        in_specs=[
            pl.BlockSpec((tile_s, B, D), lambda i, seed_ref: (i, 0, 0)),
            # Full pe is passed; the per-tile rows are picked via the index_map
            # (no pe[:S] slice/copy in the wrapper).
            pl.BlockSpec((tile_s, 1, D), lambda i, seed_ref: (i, 0, 0)),
        ],
        out_specs=pl.BlockSpec((tile_s, B, D), lambda i, seed_ref: (i, 0, 0)),
    )

    # TODO(synk): input_output_aliases={1: 0} would let XLA reuse x's HBM buffer
    # for the output; omitted to keep the run path maximally portable.
    return pl.pallas_call(
        kernel,
        out_shape=jax.ShapeDtypeStruct((S, B, D), x.dtype),
        grid_spec=grid_spec,
        compiler_params=pltpu.CompilerParams(
            dimension_semantics=("parallel",),       # tiles independent (v7x: 2 TCs)
            vmem_limit_bytes=64 * 1024 * 1024,
        ),
    )(jnp.array([seed], dtype=jnp.int32), x, pe.astype(x.dtype))


if __name__ == "__main__":
    d_model = 32
    max_len = 128
    seq_len = 64
    batch = 2
    p = 0.1

    key = jax.random.PRNGKey(0)
    x = jax.random.normal(key, (seq_len, batch, d_model), dtype=jnp.float32)
    pe = make_positional_encoding(d_model, max_len)

    ref_eval = x + pe[:seq_len]

    # Eval-mode pass (dropout disabled) -- exact reference check, multi-tile grid.
    out_eval = jax.block_until_ready(
        positional_encoding_forward(x, pe, p=p, training=False, tile_s=16)
    )
    assert out_eval.shape == (seq_len, batch, d_model)
    assert jnp.allclose(out_eval, ref_eval, atol=1e-6), "eval-mode mismatch"

    # Train-mode pass (dropout active), 4 grid tiles of 16 rows each.
    out_train = jax.block_until_ready(
        positional_encoding_forward(x, pe, p=p, training=True, seed=1234, tile_s=16)
    )
    assert out_train.shape == (seq_len, batch, d_model)
    scaled_ref = ref_eval / (1.0 - p)
    surviving = out_train != 0.0
    assert jnp.allclose(
        jnp.where(surviving, out_train, scaled_ref), scaled_ref, atol=1e-5
    ), "train-mode dropout scaling mismatch"
    drop_frac = float(1.0 - jnp.mean(surviving.astype(jnp.float32)))
    assert 0.0 < drop_frac < 0.5, f"implausible drop fraction {drop_frac}"

    print("KERNEL_OK")
</pallas_src>

<mosaic_0001>
module attributes {stable_mosaic.version = 11 : i64} {
  func.func @_pe_dropout_kernel(%arg0: i32, %arg1: memref<1xi32, #tpu.memory_space<smem>>, %arg2: memref<16x2x32xf32, #tpu.memory_space<vmem>>, %arg3: memref<16x1x32xf32, #tpu.memory_space<vmem>>, %arg4: memref<16x2x32xf32, #tpu.memory_space<vmem>>) attributes {dimension_semantics = [#tpu.dimension_semantics<parallel>], iteration_bounds = array<i64: 4>, scalar_prefetch = 1 : i64, scratch_operands = 0 : i64, tpu.core_type = #tpu.core_type<tc>, window_params = [{transform_indices = @transform_0, window_bounds = array<i64: 16, 2, 32>}, {transform_indices = @transform_1, window_bounds = array<i64: 16, 1, 32>}, {transform_indices = @transform_2, window_bounds = array<i64: 16, 2, 32>}]} {
    %c0 = arith.constant 0 : index
    %c0_0 = arith.constant 0 : index
    %c0_1 = arith.constant 0 : index
    %0 = vector.load %arg2[%c0, %c0_0, %c0_1] : memref<16x2x32xf32, #tpu.memory_space<vmem>>, vector<16x2x32xf32>
    %c0_2 = arith.constant 0 : index
    %c0_3 = arith.constant 0 : index
    %c0_4 = arith.constant 0 : index
    %1 = vector.load %arg3[%c0_2, %c0_3, %c0_4] : memref<16x1x32xf32, #tpu.memory_space<vmem>>, vector<16x1x32xf32>
    %2 = vector.broadcast %1 : vector<16x1x32xf32> to vector<16x2x32xf32>
    %3 = arith.addf %0, %2 : vector<16x2x32xf32>
    %c0_5 = arith.constant 0 : index
    %c0_6 = arith.constant 0 : index
    %c0_7 = arith.constant 0 : index
    %4 = vector.load %arg4[%c0_5, %c0_6, %c0_7] : memref<16x2x32xf32, #tpu.memory_space<vmem>>, vector<16x2x32xf32>
    tpu.vector_store %arg4[%c0_5, %c0_6, %c0_7], %3 {strides = array<i32>} : memref<16x2x32xf32, #tpu.memory_space<vmem>>, vector<16x2x32xf32>,
    return
  }
  func.func @transform_0(%arg0: i32, %arg1: memref<1xi32, #tpu.memory_space<smem>>) -> (i32, i32, i32) {
    %c0_i32 = arith.constant 0 : i32
    %c0_i32_0 = arith.constant 0 : i32
    %c0_i32_1 = arith.constant 0 : i32
    return %arg0, %c0_i32, %c0_i32_0 : i32, i32, i32
  }
  func.func @transform_1(%arg0: i32, %arg1: memref<1xi32, #tpu.memory_space<smem>>) -> (i32, i32, i32) {
    %c0_i32 = arith.constant 0 : i32
    %c0_i32_0 = arith.constant 0 : i32
    %c0_i32_1 = arith.constant 0 : i32
    return %arg0, %c0_i32, %c0_i32_0 : i32, i32, i32
  }
  func.func @transform_2(%arg0: i32, %arg1: memref<1xi32, #tpu.memory_space<smem>>) -> (i32, i32, i32) {
    %c0_i32 = arith.constant 0 : i32
    %c0_i32_0 = arith.constant 0 : i32
    %c0_i32_1 = arith.constant 0 : i32
    return %arg0, %c0_i32, %c0_i32_0 : i32, i32, i32
  }
}

</mosaic_0001>

<bundles_post_ra>
// kernel: tpu_custom_call.1
= control target key start
LH: loop header
LB: loop body
LE: loop exit
PB: predicated region body
PF: predicated region fallthrough
CT: control target
= control target key end

     0   :  { %9 = vsyncpa [#allocation5], 0  ;;  %s1018_s0 = inlined_call_operand.<no memory space> [shape: s32[1], index: 0, kind: input, shape index: {}]   ;;  %s1019_s1 = inlined_call_operand.hbm [shape: f32[64,2,32], index: 1, kind: input, shape index: {}]   ;;  %s1020_s2 = inlined_call_operand.hbm [shape: f32[128,1,32], index: 2, kind: input, shape index: {}]   ;;  %s1021_s3 = inlined_call_operand.hbm [shape: f32[64,2,32], index: 3, kind: output, shape index: {}]  }
   0x1   :  { %11 = vsyncpa [#allocation5 + $0x1], 0 }
   0x2   :  { %12 = vsyncpa [#allocation8], 0 }
   0x3   :  { %14 = vsyncpa [#allocation8 + $0x1], 0 }
   0x4   :  { %15 = vsyncpa [#allocation6], 0 }
   0x5   :  { %17 = vsyncpa [#allocation6 + $0x1], 0  ;;  %s733_s12 = smov 0   ;;  %s735_s13 = smov 0  }
   0x6   :  { %s737_s0 = smov 0   ;;  %s739_s14 = smov 0  }
   0x7 LB: > { %s754_s15 = sadd.s32 4294967295, %s702_s14   ;;  %s478_s16 = sadd.s32 4294967294, %s702_s14   ;;  %s702_s14 = sphi %s739_s14, %s1036_s14   ;;  %s698_s0 = sphi %s737_s0, %s1035_s0   ;;  %s694_s13 = sphi %s735_s13, %s1034_s13   ;;  %s690_s12 = sphi %s733_s12, %s1033_s12  }
   0x8   : > { %s758_s17 = sadd.s32 1, %s702_s14   ;;  %s30_s18 = sadd.s32 1, %s698_s0 }
   0x9   : > { %s27_s19 = ssub.s32 %s702_s14, %s758_s17  ;;  %p37_p0 = scmp.ne.s32.totalorder %s698_s0, %s694_s13 }
   0xa   : > { %p28_p1 = scmp.eq.s32.totalorder %s27_s19, 0  ;;  %p38_p2 = scmp.eq.s32.totalorder %s702_s14, 0 }
   0xb   : > { %p43_p3 = scmp.ne.s32.totalorder %s694_s13, %s690_s12  ;;  %p44_p4 = scmp.eq.s32.totalorder %s754_s15, 0 }
   0xc   : > { %s770_s20 = scalar_select %p28_p1, %s698_s0, %s30_s18  }
   0xd   : > { %p772_p5 = por %p38_p2, %p37_p0  ;;  %p776_p6 = por %p44_p4, %p43_p3 }
   0xe   : > { %p93_p7 = scmp.eq.s32.totalorder %s754_s15, 3  ;;  %p99_p8 = scmp.eq.s32.totalorder %s478_s16, 3 }
   0xf   : > { %s1025_s22 = scalar_select %p776_p6, 1, 0 }
  0x10   : > { %p532_p9 = scmp.lt.s32.totalorder %s702_s14, 4  ;;  %p782_p10 = por %p93_p7, %p37_p0 }
  0x11   : > { %p786_p11 = por %p99_p8, %p43_p3  ;;  %s791_s25 = sand.u32 1, %s698_s0  }
  0x12   : > { %s1026_s23 = scalar_select %p782_p10, 1, 0 }
  0x13   : > { %s1027_s24 = scalar_select %p786_p11, 1, 0 }
  0x14   : > { %s512_s26 = sshll.u32 %s702_s14, 9  ;;  %s481_s27 = sshll.u32 %s791_s25, 5 }
  0x15   : > { %s798_s30 = scalar_lea.hbm %s1019_s1, %s512_s26  ;;  %s123_s4 = scalar_lea.vmem [#allocation4], %s481_s27 }
  0x16   : > { %s130_s5 = sshll.u32 %s123_s4, 4  ;;  %p802_p12 = pnand %p532_p9, %p772_p5  ;;  %s806_s5 = int_to_ptr.vmem [resolvable:$true] %s130_s5 }
  0x17   : > { %s120_s7 = scalar_lea.sflag [#allocation5], %s791_s25  ;;  %s572_s8 = scalar_lea.hbm %s798_s30, 512 }
  0x18   : > { %p573_p13 = scmp.ne.s32.totalorder %s798_s30, %s572_s8  ;;  %p574_p0 = pneg %p802_p12 }
  0x19   : > { %s577_s11 = scalar_lea.hbm %s1019_s1, 2048  ;;  %p578_p3 = scmp.lt.u32.totalorder %s798_s30, %s1019_s1 }
  0x1a   : > { %p575_p1 = pnand %p574_p0, %p573_p13  ;;  %p579_p4 = scmp.lt.u32.totalorder %s577_s11, %s572_s8 }
  0x1b   : > { %p581_p7 = scmp.lt.u32.totalorder %s572_s8, %s798_s30 }
  0x1c   : > { %p576_p2 = pneg %p575_p1  ;;  %p580_p5 = por %p579_p4, %p578_p3 }
  0x1e   : > { %p582_p8 = por %p581_p7, %p580_p5 }
  0x20   : > { %p583_p9 = pnand %p582_p8, %p576_p2 }
  0x22   : > { %586 = shalt.err (!%p583_p9)
}
  0x23   : > { %s587_s19 = scalar_lea.vmem %s806_s5, 512  ;;  %s704_s21 = smov [#allocation4]  }
  0x24   : > { %p588_p13 = scmp.ne.s32.totalorder %s806_s5, %s587_s19  ;;  %s592_s26 = sshll.u32 %s704_s21, 4  ;;  %s593_s26 = int_to_ptr.vmem [resolvable:$false] %s592_s26 }
  0x25   : > { %s594_s27 = scalar_lea.vmem %s593_s26, 1024  ;;  %p595_p10 = scmp.lt.s32.totalorder %s806_s5, %s593_s26 }
  0x26   : > { %p590_p1 = pnand %p588_p13, %p574_p0  ;;  %p596_p3 = scmp.lt.s32.totalorder %s594_s27, %s587_s19 }
  0x28   : > { %p591_p11 = pneg %p590_p1  ;;  %p597_p4 = por %p596_p3, %p595_p10 }
  0x2a   : > { %p598_p5 = pnand %p597_p4, %p591_p11 }
  0x2c   : > { %601 = shalt.err (!%p598_p5)
}
  0x2d   : > { %s705_s28 = smov 32   ;;  %s706_s29 = smov 2  }
  0x2e   : > { %524 = dma.hbm_to_vmem [thread:$0]  (!%p802_p12), %s798_s30, 512, %s806_s5, %s120_s7, %s705_s28, %s705_s28, %s706_s29  }
  0x2f   : > { %p487_p2 = scmp.ge.s32.totalorder %s702_s14, 1  ;;  %p159_p7 = scmp.lt.s32.totalorder %s702_s14, 5 }
  0x30   : > { %s484_s4 = sshll.u32 %s791_s25, 4  ;;  %s513_s9 = sshll.u32 %s702_s14, 8 }
  0x31   : > { %p839_p10 = pnand %p487_p2, %p159_p7  ;;  %s144_s10 = scalar_lea.vmem [#allocation7], %s484_s4 }
  0x32   : > { %s151_s11 = sshll.u32 %s144_s10, 4  ;;  %s847_s19 = scalar_lea.hbm %s1020_s2, %s513_s9  ;;  %s849_s11 = int_to_ptr.vmem [resolvable:$true] %s151_s11 }
  0x33   : > { %s141_s30 = scalar_lea.sflag [#allocation8], %s791_s25  ;;  %s602_s5 = scalar_lea.hbm %s847_s19, 256 }
  0x34   : > { %p603_p11 = scmp.ne.s32.totalorder %s847_s19, %s602_s5  ;;  %s607_s26 = scalar_lea.hbm %s1020_s2, 2048 }
  0x35   : > { %p608_p13 = scmp.lt.u32.totalorder %s847_s19, %s1020_s2  ;;  %p609_p1 = scmp.lt.u32.totalorder %s607_s26, %s602_s5 }
  0x36   : > { %p605_p8 = pnand %p603_p11, %p574_p0  ;;  %p611_p4 = scmp.lt.u32.totalorder %s602_s5, %s847_s19 }
  0x37   : > { %p610_p3 = por %p609_p1, %p608_p13 }
  0x38   : > { %p606_p9 = pneg %p605_p8 }
  0x39   : > { %p612_p5 = por %p611_p4, %p610_p3 }
  0x3b   : > { %p613_p2 = pnand %p612_p5, %p606_p9 }
  0x3d   : > { %616 = shalt.err (!%p613_p2)
}
  0x3e   : > { %s617_s29 = scalar_lea.vmem %s849_s11, 256  ;;  %s707_s4 = smov [#allocation7]  }
  0x3f   : > { %p618_p7 = scmp.ne.s32.totalorder %s849_s11, %s617_s29  ;;  %s622_s9 = sshll.u32 %s707_s4, 4  ;;  %s623_s9 = int_to_ptr.vmem [resolvable:$false] %s622_s9 }
  0x40   : > { %s624_s10 = scalar_lea.vmem %s623_s9, 512  ;;  %p625_p6 = scmp.lt.s32.totalorder %s849_s11, %s623_s9 }
  0x41   : > { %p620_p11 = pnand %p618_p7, %p574_p0  ;;  %p626_p13 = scmp.lt.s32.totalorder %s624_s10, %s617_s29 }
  0x43   : > { %p621_p8 = pneg %p620_p11  ;;  %p627_p1 = por %p626_p13, %p625_p6 }
  0x45   : > { %p628_p3 = pnand %p627_p1, %p621_p8 }
  0x47   : > { %631 = shalt.err (!%p628_p3)
}
  0x48   : > { %s708_s16 = smov 16   ;;  %s709_s18 = smov 1  }
  0x49   : > { %527 = dma.hbm_to_vmem [thread:$0]  (!%p802_p12), %s847_s19, 256, %s849_s11, %s141_s30, %s708_s16, %s708_s16, %s709_s18  }
  0x4a   : > { %163 = sbr.rel (%p839_p10) target bundleno = 125 (0x7d), region = 28  ;;  %s880_s5 = sand.u32 (!%p839_p10), 1, %s694_s13  }
  0x4b   : > { %s488_s7 = sshll.u32 (!%p839_p10), %s880_s5, 5  ;;  %s166_s21 = scalar_lea.sflag (!%p839_p10), [#allocation5], %s880_s5 }
  0x4c   : > { %s884_s26 = scalar_lea.vmem (!%p839_p10), [#allocation4], %s488_s7  ;;  %p1030_p6 = scmp.ne.s32.totalorder (!%p839_p10), %s1025_s22, 0 }
  0x51   : > { %677 = dma.done.wait (%p1030_p6), %s166_s21, 512  }
  0x52   : > { %679 = vsyncadd (%p1030_p6), %s166_s21, 4294966784  ;;  %s489_s25 = sshll.u32 %s880_s5, 4  ;;  %s175_s6 = scalar_lea.sflag [#allocation8], %s880_s5 }
  0x53   : > { %s892_s8 = scalar_lea.vmem [#allocation7], %s489_s25 }
  0x54   : > { %681 = dma.done.wait (%p1030_p6), %s175_s6, 256  }
  0x55   : > { %683 = vsyncadd (%p1030_p6), %s175_s6, 4294967040  ;;  %vm351_vm0 = vcmask 254976   ;;  %s514_s11 = sshll.u32 %s754_s15, 9  ;;  %s899_s19 = scalar_lea.vmem [#allocation9], %s488_s7  ;;  %v207_v0 = vld [vmem:[%s884_s26] sm:$0x3] }
  0x56   : > { %s382_s30 = sshll.u32 %s899_s19, 4  ;;  %v491_v1 = vld [vmem:[%s892_s8] ss:$0 sm:$0xff]  ;;  %v208_v2 = vld [vmem:[%s884_s26 + $0x2] sm:$0x3]  ;;  %s963_s28 = scalar_lea.hbm %s1021_s3, %s514_s11  ;;  %s967_s30 = int_to_ptr.vmem [resolvable:$true] %s382_s30 }
  0x57   : > { %v335_v3 = vadd.f32 %v491_v1, %v207_v0  ;;  %v492_v4 = vld [vmem:[%s892_s8 + $0x1] ss:$0 sm:$0xff]  ;;  %v209_v5 = vld [vmem:[%s884_s26 + $0x4] sm:$0x3]  ;;  %v493_v6 = vld [vmem:[%s892_s8 + $0x2] ss:$0 sm:$0xff] }
  0x58   : > { %v336_v7 = vadd.f32 %v492_v4, %v208_v2  ;;  %v337_v8 = vadd.f32 %v493_v6, %v209_v5  ;;  %v210_v9 = vld [vmem:[%s884_s26 + $0x6] sm:$0x3]  ;;  %v494_v10 = vld [vmem:[%s892_s8 + $0x3] ss:$0 sm:$0xff]  ;;  %v211_v11 = vld [vmem:[%s884_s26 + $0x8] sm:$0x3] }
  0x59   : > { %352 = vst.msk [vmem:[%s899_s19] sm:$0x3] %vm351_vm0, %v335_v3  ;;  %v338_v12 = vadd.f32 %v494_v10, %v210_v9  ;;  %v495_v13 = vld [vmem:[%s892_s8 + $0x4] ss:$0 sm:$0xff]  ;;  %v212_v14 = vld [vmem:[%s884_s26 + $0xa] sm:$0x3] }
  0x5a   : > { %v496_v15 = vld [vmem:[%s892_s8 + $0x5] ss:$0 sm:$0xff]  ;;  %353 = vst.msk [vmem:[%s899_s19 + $0x2] sm:$0x3] %vm351_vm0, %v336_v7  ;;  %354 = vst.msk [vmem:[%s899_s19 + $0x4] sm:$0x3] %vm351_vm0, %v337_v8  ;;  %v339_v16 = vadd.f32 %v495_v13, %v211_v11 }
  0x5b   : > { %v340_v17 = vadd.f32 %v496_v15, %v212_v14  ;;  %v213_v18 = vld [vmem:[%s884_s26 + $0xc] sm:$0x3]  ;;  %v497_v19 = vld [vmem:[%s892_s8 + $0x6] ss:$0 sm:$0xff]  ;;  %v214_v20 = vld [vmem:[%s884_s26 + $0xe] sm:$0x3] }
  0x5c   : > { %355 = vst.msk [vmem:[%s899_s19 + $0x6] sm:$0x3] %vm351_vm0, %v338_v12  ;;  %v341_v21 = vadd.f32 %v497_v19, %v213_v18  ;;  %v498_v22 = vld [vmem:[%s892_s8 + $0x7] ss:$0 sm:$0xff]  ;;  %v215_v23 = vld [vmem:[%s884_s26 + $0x10] sm:$0x3] }
  0x5d   : > { %v499_v24 = vld [vmem:[%s892_s8 + $0x8] ss:$0 sm:$0xff]  ;;  %356 = vst.msk [vmem:[%s899_s19 + $0x8] sm:$0x3] %vm351_vm0, %v339_v16  ;;  %357 = vst.msk [vmem:[%s899_s19 + $0xa] sm:$0x3] %vm351_vm0, %v340_v17  ;;  %v342_v25 = vadd.f32 %v498_v22, %v214_v20 }
  0x5e   : > { %v343_v26 = vadd.f32 %v499_v24, %v215_v23  ;;  %v216_v27 = vld [vmem:[%s884_s26 + $0x12] sm:$0x3]  ;;  %v500_v28 = vld [vmem:[%s892_s8 + $0x9] ss:$0 sm:$0xff]  ;;  %v217_v29 = vld [vmem:[%s884_s26 + $0x14] sm:$0x3] }
  0x5f   : > { %358 = vst.msk [vmem:[%s899_s19 + $0xc] sm:$0x3] %vm351_vm0, %v341_v21  ;;  %v344_v30 = vadd.f32 %v500_v28, %v216_v27  ;;  %v501_v31 = vld [vmem:[%s892_s8 + $0xa] ss:$0 sm:$0xff]  ;;  %v218_v32 = vld [vmem:[%s884_s26 + $0x16] sm:$0x3] }
  0x60   : > { %v502_v33 = vld [vmem:[%s892_s8 + $0xb] ss:$0 sm:$0xff]  ;;  %359 = vst.msk [vmem:[%s899_s19 + $0xe] sm:$0x3] %vm351_vm0, %v342_v25  ;;  %360 = vst.msk [vmem:[%s899_s19 + $0x10] sm:$0x3] %vm351_vm0, %v343_v26  ;;  %v345_v34 = vadd.f32 %v501_v31, %v217_v29 }
  0x61   : > { %v346_v35 = vadd.f32 %v502_v33, %v218_v32  ;;  %v219_v36 = vld [vmem:[%s884_s26 + $0x18] sm:$0x3]  ;;  %v503_v37 = vld [vmem:[%s892_s8 + $0xc] ss:$0 sm:$0xff]  ;;  %v220_v38 = vld [vmem:[%s884_s26 + $0x1a] sm:$0x3] }
  0x62   : > { %361 = vst.msk [vmem:[%s899_s19 + $0x12] sm:$0x3] %vm351_vm0, %v344_v30  ;;  %v347_v39 = vadd.f32 %v503_v37, %v219_v36  ;;  %v504_v40 = vld [vmem:[%s892_s8 + $0xd] ss:$0 sm:$0xff]  ;;  %v505_v42 = vld [vmem:[%s892_s8 + $0xe] ss:$0 sm:$0xff] }
  0x63   : > { %v221_v41 = vld [vmem:[%s884_s26 + $0x1c] sm:$0x3]  ;;  %362 = vst.msk [vmem:[%s899_s19 + $0x14] sm:$0x3] %vm351_vm0, %v345_v34  ;;  %363 = vst.msk [vmem:[%s899_s19 + $0x16] sm:$0x3] %vm351_vm0, %v346_v35  ;;  %v348_v43 = vadd.f32 %v504_v40, %v220_v38 }
  0x64   : > { %v349_v44 = vadd.f32 %v505_v42, %v221_v41  ;;  %v222_v45 = vld [vmem:[%s884_s26 + $0x1e] sm:$0x3]  ;;  %364 = vst.msk [vmem:[%s899_s19 + $0x18] sm:$0x3] %vm351_vm0, %v347_v39  ;;  %s369_s15 = scalar_lea.sflag [#allocation6], %s880_s5  ;;  %s632_s29 = scalar_lea.vmem %s967_s30, 512 }
  0x65   : > { %v506_v46 = vld [vmem:[%s892_s8 + $0xf] ss:$0 sm:$0xff]  ;;  %365 = vst.msk [vmem:[%s899_s19 + $0x1a] sm:$0x3] %vm351_vm0, %v348_v43  ;;  %p633_p12 = scmp.ne.s32.totalorder %s967_s30, %s632_s29  ;;  %p1031_p0 = scmp.ne.s32.totalorder %s1026_s23, 0 }
  0x66   : > { %v350_v47 = vadd.f32 %v506_v46, %v222_v45  ;;  %366 = vst.msk [vmem:[%s899_s19 + $0x1c] sm:$0x3] %vm351_vm0, %v349_v44  ;;  %s710_s4 = smov [#allocation9]  }
  0x67   : > { %p634_p10 = pnand %p633_p12, %p1031_p0  ;;  %s636_s9 = sshll.u32 %s710_s4, 4  ;;  %s637_s9 = int_to_ptr.vmem [resolvable:$false] %s636_s9 }
  0x68   : > { %367 = vst.msk [vmem:[%s899_s19 + $0x1e] sm:$0x3] %vm351_vm0, %v350_v47  ;;  %s638_s10 = scalar_lea.vmem %s637_s9, 1024  ;;  %p639_p4 = scmp.lt.s32.totalorder %s967_s30, %s637_s9 }
  0x69   : > { %p635_p9 = pneg %p634_p10  ;;  %p640_p5 = scmp.lt.s32.totalorder %s638_s10, %s632_s29 }
  0x6b   : > { %p641_p2 = por %p640_p5, %p639_p4 }
  0x6d   : > { %p642_p7 = pnand %p641_p2, %p635_p9 }
  0x6f   : > { %645 = shalt.err (!%p642_p7)
}
  0x70   : > { %s646_s16 = scalar_lea.hbm %s963_s28, 512  ;;  %s650_s21 = scalar_lea.hbm %s1021_s3, 2048 }
  0x71   : > { %p647_p11 = scmp.ne.s32.totalorder %s963_s28, %s646_s16  ;;  %p651_p1 = scmp.lt.u32.totalorder %s963_s28, %s1021_s3 }
  0x72   : > { %p652_p3 = scmp.lt.u32.totalorder %s650_s21, %s646_s16  ;;  %p654_p12 = scmp.lt.u32.totalorder %s646_s16, %s963_s28 }
  0x73   : > { %p648_p8 = pnand %p647_p11, %p1031_p0 }
  0x74   : > { %p653_p6 = por %p652_p3, %p651_p1 }
  0x75   : > { %p649_p13 = pneg %p648_p8 }
  0x76   : > { %p655_p10 = por %p654_p12, %p653_p6 }
  0x78   : > { %p656_p9 = pnand %p655_p10, %p649_p13 }
  0x7a   : > { %659 = shalt.err (!%p656_p9)
}
  0x7b   : > { %s711_s6 = smov 32   ;;  %s712_s8 = smov 2  }
  0x7c   : > { %519 = dma.vmem_to_hbm [thread:$0]  (%p1031_p0), %s967_s30, 512, %s963_s28, %s369_s15, %s711_s6, %s711_s6, %s712_s8  }
  0x7d PF: > { %p533_p4 = scmp.ge.s32.totalorder %s702_s14, 2  ;;  %s397_s11 = sand.u32 1, %s690_s12  }
  0x7e   : > { %p1032_p5 = scmp.ne.s32.totalorder %s1027_s24, 0  ;;  %s398_s19 = scalar_lea.sflag [#allocation6], %s397_s11 }
  0x80   : > { %p529_p2 = pnand %p533_p4, %p1032_p5 }
  0x82   : > { %685 = dma.done.wait (!%p529_p2), %s398_s19, 512  }
  0x83   : > { %687 = vsyncadd (!%p529_p2), %s398_s19, 4294966784  ;;  %p20_p7 = scmp.ge.s32.totalorder %s758_s17, 6   ;;  %s1033_s12 = smov %s694_s13 }
  0x84   : > { %s1034_s13 = smov %s698_s0  ;;  %s1035_s0 = smov %s770_s20 }
  0x85   : > { %s1036_s14 = smov %s758_s17  ;;  %22 = sbr.rel (!%p20_p7) target bundleno = 7 (0x7), region = 86 }
  0x8c   :  { %403 = vsyncpa [#allocation5], 1 }
  0x8d   :  { %405 = vsyncpa [#allocation5 + $0x1], 1 }
  0x8e   :  { %406 = vsyncpa [#allocation8], 1 }
  0x8f   :  { %408 = vsyncpa [#allocation8 + $0x1], 1 }
  0x90   :  { %409 = vsyncpa [#allocation6], 1 }
  0x91   :  { %411 = vsyncpa [#allocation6 + $0x1], 1 }

</bundles_post_ra>
